<compile_context>
chip_gen: v6e
topology: v6e:2x2x1
jax: 0.10.0
libtpu: 0.0.40
codegen_flags: <defaults>
</compile_context>

<pallas_src>
import jax
import jax.numpy as jnp
from jax.experimental import pallas as pl
from jax.experimental.pallas import tpu as pltpu


def _round_up(x: int, m: int) -> int:
    return ((x + m - 1) // m) * m


def _hw_config():
    """(vertex_tile, edge_tile, vmem_limit_bytes) tuned per TPU generation."""
    vmem_cap = None
    try:
        info = pltpu.get_tpu_info()
        vmem_cap = int(getattr(info, "vmem_capacity_bytes"))
    except Exception:
        vmem_cap = None
    if vmem_cap is not None and vmem_cap >= 100 * 1024 * 1024:
        # v4 / v5e / v6e: 128 MiB VMEM -> bigger tiles, generous scoped limit
        return 1024, 1024, 96 * 1024 * 1024
    if vmem_cap is not None and vmem_cap >= 60 * 1024 * 1024:
        # v7x: 64 MiB per TensorCore -> keep 512x512 tiles, modest limit
        return 512, 512, 48 * 1024 * 1024
    # unknown hardware -> previously-validated conservative defaults
    return 512, 512, 32 * 1024 * 1024


# --------------------------------------------------------------------------- #
# Phase 0: theta (no bias):  Y^T[c, n] = sum_i W[c, i] * X[n, i]    (C_pad, N) #
# --------------------------------------------------------------------------- #
def _theta_kernel(x_ref, w_ref, yt_ref):
    yt_ref[...] = jax.lax.dot_general(
        w_ref[...],                                # bf16 (pre-cast on host)
        x_ref[...].astype(jnp.bfloat16),           # bf16 operand -> fast MXU path
        dimension_numbers=(((1,), (1,)), ((), ())),
        preferred_element_type=jnp.float32,
    ).astype(yt_ref.dtype)


# --------------------------------------------------------------------------- #
# Phase 1: XE^T = (Y^T @ H) * inv_de + b              shape (C_pad, M_pad)     #
#   grid = (edge_tiles, vertex_tiles); reduction over vertices (axis 1).       #
# --------------------------------------------------------------------------- #
def _v2e_kernel(yt_ref, h_ref, inv_de_ref, b_ref, xet_ref, acc_ref):
    k = pl.program_id(1)

    @pl.when(k == 0)
    def _():
        acc_ref[...] = jnp.zeros_like(acc_ref)

    # acc[c, m] += sum_n Y^T[c, n] * H[n, m]   (bf16 operands, f32 accumulate)
    acc_ref[...] += jnp.dot(
        yt_ref[...], h_ref[...], preferred_element_type=jnp.float32
    )

    @pl.when(k == pl.num_programs(1) - 1)
    def _():
        # mean over member vertices + deferred bias, once per output tile (f32).
        xet_ref[...] = (acc_ref[...] * inv_de_ref[...] + b_ref[...]).astype(xet_ref.dtype)


# --------------------------------------------------------------------------- #
# Phase 2: XV = relu( (H @ XE) * inv_dv )              shape (N_pad, C_pad)    #
#   grid = (vertex_tiles, edge_tiles); reduction over hyperedges (axis 1).     #
# --------------------------------------------------------------------------- #
def _e2v_kernel(h_ref, xet_ref, inv_dv_ref, xv_ref, acc_ref):
    k = pl.program_id(1)

    @pl.when(k == 0)
    def _():
        acc_ref[...] = jnp.zeros_like(acc_ref)

    # acc[n, c] += sum_m H[n, m] * XE^T[c, m]   (NT "q @ k^T" orientation)
    acc_ref[...] += jax.lax.dot_general(
        h_ref[...], xet_ref[...],
        dimension_numbers=(((1,), (1,)), ((), ())),
        preferred_element_type=jnp.float32,
    )

    @pl.when(k == pl.num_programs(1) - 1)
    def _():
        xv_ref[...] = jnp.maximum(acc_ref[...] * inv_dv_ref[...], 0.0).astype(xv_ref.dtype)


# --------------------------------------------------------------------------- #
# Wrapper                                                                      #
# --------------------------------------------------------------------------- #
def hgnnp_conv(X, W, b, H):
    """HGNNPConv forward.

    X: (N, Cin) float32 vertex features
    W: (Cout, Cin) float32 (torch nn.Linear weight layout)
    b: (Cout,)   float32 bias
    H: (N, M)    incidence matrix (0/1)
    """
    N, Cin = X.shape
    Cout = W.shape[0]
    M = H.shape[1]

    tile_v, tile_e, vmem_limit = _hw_config()

    # ---- host-side hypergraph preprocessing (degrees / safe reciprocals) ----
    Hf = H.astype(jnp.float32)
    deg_e = jnp.sum(Hf, axis=0)
    deg_v = jnp.sum(Hf, axis=1)
    inv_de = jnp.where(deg_e > 0, 1.0 / deg_e, 0.0)
    inv_dv = jnp.where(deg_v > 0, 1.0 / deg_v, 0.0)

    # ---- tiling / padding ----------------------------------------------------
    C_pad = _round_up(Cout, 128)             # lane-dense channel axis
    Cin_pad = _round_up(Cin, 128)            # lane-dense theta contraction axis

    TN = _round_up(N, 8) if N <= tile_v else tile_v      # vertex tile (multiple of 8 / 128)
    TM = _round_up(M, 128) if M <= tile_e else tile_e    # edge tile (multiple of 128)
    N_pad = _round_up(N, TN)
    M_pad = _round_up(M, TM)

    # Megacore (v7x): give each phase's 'parallel' axis >= 2 tiles when cheap.
    if M_pad // TM == 1 and TM % 256 == 0:
        TM //= 2                              # phase-1 parallel axis (edge tiles)
    if N_pad // TN == 1 and TN % 256 == 0:
        TN //= 2                              # phase-2 parallel axis (vertex tiles)

    n_vtiles = N_pad // TN
    n_etiles = M_pad // TM

    # Residency decisions (fetch-once operands) within a VMEM budget.
    budget = int(0.8 * vmem_limit)

    def _p1_bytes(tn1):                       # phase-1 estimated working set
        return (2 * C_pad * tn1 * 2 + 2 * tn1 * TM * 2 + 2 * C_pad * TM * 2
                + C_pad * TM * 4 + 2 * TM * 4 + 2 * C_pad * 4)

    TN1 = N_pad if _p1_bytes(N_pad) <= budget else TN     # resident Y^T if it fits
    n_vtiles1 = N_pad // TN1

    def _p2_bytes(tm2):                       # phase-2 estimated working set
        return (2 * TN * tm2 * 2 + 2 * C_pad * tm2 * 2 + 2 * TN * C_pad * 4
                + TN * C_pad * 4 + 2 * TN * 4)

    TM2 = M_pad if _p2_bytes(M_pad) <= budget else TM     # resident XE^T if it fits
    n_etiles2 = M_pad // TM2

    # ---- padded operands ------------------------------------------------------
    Xp = jnp.zeros((N_pad, Cin_pad), jnp.float32).at[:N, :Cin].set(X.astype(jnp.float32))
    Wp = jnp.zeros((C_pad, Cin_pad), jnp.bfloat16).at[:Cout, :Cin].set(W.astype(jnp.bfloat16))
    bp = jnp.zeros((C_pad, 1), jnp.float32).at[:Cout, 0].set(b.reshape(-1).astype(jnp.float32))
    # single bf16 copy of H (0/1 is exact in bf16) -- no materialized H^T
    Hp = jnp.zeros((N_pad, M_pad), jnp.bfloat16).at[:N, :M].set(Hf.astype(jnp.bfloat16))
    inv_de_p = jnp.zeros((1, M_pad), jnp.float32).at[0, :M].set(inv_de)   # lane-dense
    inv_dv_p = jnp.zeros((N_pad, 1), jnp.float32).at[:N, 0].set(inv_dv)

    cparams_1d = pltpu.CompilerParams(
        dimension_semantics=("parallel",), vmem_limit_bytes=vmem_limit)
    cparams_2d = pltpu.CompilerParams(
        dimension_semantics=("parallel", "arbitrary"), vmem_limit_bytes=vmem_limit)

    h_bytes = N_pad * M_pad * 2

    # ---- phase 0: theta (computed once, bf16 output, no bias) -----------------
    yt = pl.pallas_call(
        _theta_kernel,
        out_shape=jax.ShapeDtypeStruct((C_pad, N_pad), jnp.bfloat16),
        grid_spec=pltpu.PrefetchScalarGridSpec(
            num_scalar_prefetch=0,
            grid=(n_vtiles,),
            in_specs=[
                pl.BlockSpec((TN, Cin_pad), lambda i: (i, 0)),        # X tile
                pl.BlockSpec((C_pad, Cin_pad), lambda i: (0, 0)),     # W (resident, bf16)
            ],
            out_specs=pl.BlockSpec((C_pad, TN), lambda i: (0, i)),
        ),
        compiler_params=cparams_1d,
        cost_estimate=pl.CostEstimate(
            flops=2 * N_pad * Cin_pad * C_pad,
            transcendentals=0,
            bytes_accessed=N_pad * Cin_pad * 4 + C_pad * Cin_pad * 2 + C_pad * N_pad * 2,
        ),
    )(Xp, Wp)

    # ---- phase 1: v2e (mean) + deferred bias -----------------------------------
    xet = pl.pallas_call(
        _v2e_kernel,
        out_shape=jax.ShapeDtypeStruct((C_pad, M_pad), jnp.bfloat16),
        grid_spec=pltpu.PrefetchScalarGridSpec(
            num_scalar_prefetch=0,
            grid=(n_etiles, n_vtiles1),
            in_specs=[
                pl.BlockSpec((C_pad, TN1), lambda i, k: (0, k)),      # Y^T (resident if TN1==N_pad)
                pl.BlockSpec((TN1, TM), lambda i, k: (k, i)),         # H, transposed walk
                pl.BlockSpec((1, TM), lambda i, k: (0, i)),           # 1/deg_e (lane-dense)
                pl.BlockSpec((C_pad, 1), lambda i, k: (0, 0)),        # bias (epilogue, f32)
            ],
            out_specs=pl.BlockSpec((C_pad, TM), lambda i, k: (0, i)),
            scratch_shapes=[pltpu.VMEM((C_pad, TM), jnp.float32)],
        ),
        compiler_params=cparams_2d,
        cost_estimate=pl.CostEstimate(
            flops=2 * N_pad * M_pad * C_pad,
            transcendentals=0,
            bytes_accessed=h_bytes + C_pad * N_pad * 2 * max(1, n_etiles if TN1 != N_pad else 1)
                           + C_pad * M_pad * 2,
        ),
    )(yt, Hp, inv_de_p, bp)

    # ---- phase 2: e2v (mean) + relu --------------------------------------------
    xv = pl.pallas_call(
        _e2v_kernel,
        out_shape=jax.ShapeDtypeStruct((N_pad, C_pad), jnp.float32),
        grid_spec=pltpu.PrefetchScalarGridSpec(
            num_scalar_prefetch=0,
            grid=(n_vtiles, n_etiles2),
            in_specs=[
                pl.BlockSpec((TN, TM2), lambda i, k: (i, k)),         # H
                pl.BlockSpec((C_pad, TM2), lambda i, k: (0, k)),      # XE^T (resident if TM2==M_pad)
                pl.BlockSpec((TN, 1), lambda i, k: (i, 0)),           # 1/deg_v
            ],
            out_specs=pl.BlockSpec((TN, C_pad), lambda i, k: (i, 0)),
            scratch_shapes=[pltpu.VMEM((TN, C_pad), jnp.float32)],
        ),
        compiler_params=cparams_2d,
        cost_estimate=pl.CostEstimate(
            flops=2 * N_pad * M_pad * C_pad,
            transcendentals=0,
            bytes_accessed=h_bytes
                           + C_pad * M_pad * 2 * (1 if TM2 == M_pad else n_vtiles)
                           + N_pad * C_pad * 4,
        ),
    )(Hp, xet, inv_dv_p)

    return xv[:N, :Cout]


# --------------------------------------------------------------------------- #
# Pure-JAX f32 reference                                                       #
# --------------------------------------------------------------------------- #
def _reference(X, W, b, H):
    y = X @ W.T + b
    deg_e = H.sum(axis=0)
    deg_v = H.sum(axis=1)
    inv_de = jnp.where(deg_e > 0, 1.0 / deg_e, 0.0)
    inv_dv = jnp.where(deg_v > 0, 1.0 / deg_v, 0.0)
    xe = (H.T @ y) * inv_de[:, None]
    xv = (H @ xe) * inv_dv[:, None]
    return jnp.maximum(xv, 0.0)


if __name__ == "__main__":
    key = jax.random.PRNGKey(0)
    k_x, k_w, k_b, k_h = jax.random.split(key, 4)

    # Small, module-consistent shapes.
    num_vertices = 16   # N
    num_edges = 8       # M
    in_channels = 8
    out_channels = 32

    # Node features.
    X = jax.random.normal(k_x, (num_vertices, in_channels), dtype=jnp.float32)

    # Deterministic parameter init (synthetic stand-in for reset_parameters()).
    bound = 1.0 / jnp.sqrt(jnp.float32(in_channels))
    W = jax.random.uniform(k_w, (out_channels, in_channels),
                           minval=-bound, maxval=bound, dtype=jnp.float32)
    b = jax.random.uniform(k_b, (out_channels,),
                           minval=-bound, maxval=bound, dtype=jnp.float32)

    # Deterministic synthetic incidence matrix H (N x M), ~40% fill,
    # guaranteed non-empty edges / vertices.
    H = (jax.random.uniform(k_h, (num_vertices, num_edges)) < 0.4).astype(jnp.float32)
    H = jnp.maximum(H, jnp.eye(num_vertices, num_edges, dtype=jnp.float32))

    out = jax.block_until_ready(hgnnp_conv(X, W, b, H))

    ref = _reference(X, W, b, H)
    assert out.shape == (num_vertices, out_channels)
    # incidence matmuls / theta run with bf16 operands (f32 acc) -> loose tolerance
    assert jnp.allclose(out, ref, atol=5e-2, rtol=5e-2), (
        f"max abs err {float(jnp.max(jnp.abs(out - ref)))}")

    print("KERNEL_OK")
</pallas_src>

<mosaic_0001>
module attributes {stable_mosaic.version = 11 : i64} {
  func.func @_theta_kernel(%arg0: i32, %arg1: memref<16x128xf32, #tpu.memory_space<vmem>>, %arg2: memref<128x128xbf16, #tpu.memory_space<vmem>>, %arg3: memref<128x16xbf16, #tpu.memory_space<vmem>>) attributes {dimension_semantics = [#tpu.dimension_semantics<parallel>], iteration_bounds = array<i64: 1>, scalar_prefetch = 0 : i64, scratch_operands = 0 : i64, tpu.core_type = #tpu.core_type<tc>, window_params = [{transform_indices = @transform_0, window_bounds = array<i64: 16, 128>}, {pipeline_mode = #tpu.pipeline_mode<synchronous>, transform_indices = @transform_1, window_bounds = array<i64: 128, 128>}, {transform_indices = @transform_2, window_bounds = array<i64: 128, 16>}]} {
    %c0 = arith.constant 0 : index
    %c0_0 = arith.constant 0 : index
    %0 = vector.load %arg2[%c0, %c0_0] : memref<128x128xbf16, #tpu.memory_space<vmem>>, vector<128x128xbf16>
    %c0_1 = arith.constant 0 : index
    %c0_2 = arith.constant 0 : index
    %1 = vector.load %arg1[%c0_1, %c0_2] : memref<16x128xf32, #tpu.memory_space<vmem>>, vector<16x128xf32>
    %2 = arith.truncf %1 : vector<16x128xf32> to vector<16x128xbf16>
    %cst = arith.constant dense<0.000000e+00> : vector<128x16xf32>
    %3 = tpu.matmul %0, %2, %cst {dimension_numbers = #tpu.dot_dimension_numbers<[1], [1], [0], [0], [0, 0, 1, 0], [], []>} : vector<128x128xbf16>, vector<16x128xbf16>, vector<128x16xf32> -> vector<128x16xf32>
    %4 = arith.truncf %3 : vector<128x16xf32> to vector<128x16xbf16>
    %c0_3 = arith.constant 0 : index
    %c0_4 = arith.constant 0 : index
    %5 = vector.load %arg3[%c0_3, %c0_4] : memref<128x16xbf16, #tpu.memory_space<vmem>>, vector<128x16xbf16>
    tpu.vector_store %arg3[%c0_3, %c0_4], %4 {strides = array<i32>} : memref<128x16xbf16, #tpu.memory_space<vmem>>, vector<128x16xbf16>,
    return
  }
  func.func @transform_0(%arg0: i32) -> (i32, i32) {
    %c0_i32 = arith.constant 0 : i32
    %c0_i32_0 = arith.constant 0 : i32
    return %arg0, %c0_i32 : i32, i32
  }
  func.func @transform_1(%arg0: i32) -> (i32, i32) {
    %c0_i32 = arith.constant 0 : i32
    %c0_i32_0 = arith.constant 0 : i32
    %c0_i32_1 = arith.constant 0 : i32
    return %c0_i32, %c0_i32_0 : i32, i32
  }
  func.func @transform_2(%arg0: i32) -> (i32, i32) {
    %c0_i32 = arith.constant 0 : i32
    %c0_i32_0 = arith.constant 0 : i32
    return %c0_i32, %arg0 : i32, i32
  }
}

</mosaic_0001>

<bundles_post_ra>
// kernel: tpu_custom_call.1
= control target key start
LH: loop header
LB: loop body
LE: loop exit
PB: predicated region body
PF: predicated region fallthrough
CT: control target
= control target key end

     0   :  { %7 = vsyncpa [#allocation3], 0  ;;  %s509_s0 = inlined_call_operand.hbm [shape: f32[16,128], index: 0, kind: input, shape index: {}]   ;;  %s510_s1 = inlined_call_operand.hbm [shape: bf16[128,128], index: 1, kind: input, shape index: {}]   ;;  %s511_s2 = inlined_call_operand.vmem [shape: bf16[128,16], index: 2, kind: output, shape index: {}]  }
   0x1   :  { %8 = vsyncpa [#allocation5], 0  ;;  %s418_s9 = smov [#allocation2]  }
   0x2   :  { %s14_s10 = sshll.u32 %s418_s9, 4  ;;  %s15_s10 = int_to_ptr.vmem [resolvable:$true] %s14_s10 }
   0x3   :  { %s382_s11 = scalar_lea.vmem %s15_s10, 256  ;;  %p387_p1 = scmp.lt.s32.totalorder %s15_s10, %s15_s10 }
   0x4   :  { %p383_p0 = scmp.ne.s32.totalorder %s15_s10, %s382_s11  ;;  %p388_p2 = scmp.lt.s32.totalorder %s382_s11, %s382_s11 }
   0x6   :  { %p389_p3 = por %p388_p2, %p387_p1 }
   0x8   :  { %p390_p4 = pnand %p389_p3, %p383_p0 }
   0xa   :  { %393 = shalt.err (!%p390_p4)
}
   0xb   :  { %s419_s12 = smov 128   ;;  %s420_s13 = smov 8  }
   0xc   :  { %20 = dma.hbm_to_vmem [thread:$0]  %s509_s0, 256, %s15_s10, [#allocation3], %s419_s12, %s419_s12, %s420_s13  }
   0xd   :  { %s421_s16 = smov [#allocation4]  }
   0xe   :  { %s26_s17 = sshll.u32 %s421_s16, 4  ;;  %s27_s17 = int_to_ptr.vmem [resolvable:$true] %s26_s17 }
   0xf   :  { %s402_s18 = scalar_lea.vmem %s27_s17, 1024  ;;  %p407_p6 = scmp.lt.s32.totalorder %s27_s17, %s27_s17 }
  0x10   :  { %p403_p5 = scmp.ne.s32.totalorder %s27_s17, %s402_s18  ;;  %p408_p7 = scmp.lt.s32.totalorder %s402_s18, %s402_s18 }
  0x12   :  { %p409_p8 = por %p408_p7, %p407_p6 }
  0x14   :  { %p410_p9 = pnand %p409_p8, %p403_p5 }
  0x16   :  { %413 = shalt.err (!%p410_p9)
}
  0x17   :  { %s422_s19 = smov 64   ;;  %s423_s20 = smov 4  }
  0x18   :  { %32 = dma.hbm_to_vmem [thread:$0]  %s510_s1, 1024, %s27_s17, [#allocation5], %s422_s19, %s422_s19, %s423_s20  }
  0x19   :  { %414 = dma.done.wait [#allocation3], 256  }
  0x1a   :  { %415 = vsyncadd [#allocation3], 4294967040 }
  0x1b   :  { %416 = dma.done.wait [#allocation5], 1024  }
  0x1c   :  { %417 = vsyncadd [#allocation5], 4294966272  ;;  %v56_v0 = vld [vmem:[#allocation2] sm:$0xff]  ;;  %v57_v1 = vld [vmem:[#allocation2 + $0x8] sm:$0xff]  ;;  %vm268_vm0 = vcmask 125952  }
  0x1d   :  { %v58_v2 = vpack.c.bf16 %v57_v1, %v56_v0  ;;  %v366_v3 = vld [vmem:[#allocation4] sm:$0xff]   ;;  %v368_v5 = vld [vmem:[#allocation4 + $0x8] sm:$0xff]   ;;  %v370_v7 = vld [vmem:[#allocation4 + $0x10] sm:$0xff]  }
  0x1e   :  { %v367_v4 = vld [vmem:[#allocation4 + $0x20] sm:$0xff]   ;;  %342 = vmatprep.mubr.bf16.mxu0 %v366_v3  ;;  %v369_v6 = vld [vmem:[#allocation4 + $0x28] sm:$0xff]   ;;  %v371_v8 = vld [vmem:[#allocation4 + $0x30] sm:$0xff]  }
  0x1f   :  { %340 = vmatprep.subr.bf16.mxu0 %v58_v2  ;;  %358 = vmatprep.subr.bf16.mxu1 %v58_v2  ;;  %v372_v9 = vld [vmem:[#allocation4 + $0x18] sm:$0xff]  }
  0x20   :  { %341 = vmatpush3.bf16.xpose.msra.mxu0 %v58_v2  ;;  %359 = vmatpush3.bf16.xpose.msra.mxu1 %v58_v2  ;;  %v373_v10 = vld [vmem:[#allocation4 + $0x38] sm:$0xff]  }
  0x21   :  { %350 = vmatprep.mubr.bf16.mxu1 %v367_v4 }
  0x27   :  { %343 = vmatmul.mubr.bf16.vlgmr.msra.gmra.mxu0 %v368_v5  ;;  %351 = vmatmul.mubr.bf16.vlgmr.msra.gmra.mxu1 %v369_v6 }
  0x28   :  { %346 = vmatprep.mubr.bf16.mxu0 %v370_v7  ;;  %354 = vmatprep.mubr.bf16.mxu1 %v371_v8 }
  0x2f   :  { %347 = vmatmul.mubr.bf16.gmra.mxu0 %v372_v9  ;;  %355 = vmatmul.mubr.bf16.gmra.mxu1 %v373_v10 }
  0xe7   :  { %v344_v11 = vpop.f32.mrf.mxu0  ;;  %v352_v12 = vpop.f32.mrf.mxu1 }
  0xe8   :  { %v317_v13 = vpack.c.bf16 %v344_v11, %v344_v11  ;;  %v325_v14 = vpack.c.bf16 %v352_v12, %v352_v12 }
  0xe9   :  { %v141_v15 = vpop.f32.mrf.mxu0  ;;  %v173_v16 = vpop.f32.mrf.mxu1 }
  0xea   :  { %271 = vst.msk [vmem:[%s511_s2 + $0x8] sm:$0xf] %vm268_vm0, %v317_v13  ;;  %279 = vst.msk [vmem:[%s511_s2 + $0x28] sm:$0xf] %vm268_vm0, %v325_v14  ;;  %v315_v17 = vpack.c.bf16 %v141_v15, %v141_v15  ;;  %v323_v18 = vpack.c.bf16 %v173_v16, %v173_v16 }
  0xeb   :  { %v345_v19 = vpop.f32.mrf.mxu0  ;;  %v353_v20 = vpop.f32.mrf.mxu1 }
  0xec   :  { %269 = vst.msk [vmem:[%s511_s2] sm:$0xf] %vm268_vm0, %v315_v17  ;;  %277 = vst.msk [vmem:[%s511_s2 + $0x20] sm:$0xf] %vm268_vm0, %v323_v18  ;;  %v318_v21 = vpack.c.bf16 %v345_v19, %v345_v19  ;;  %v326_v22 = vpack.c.bf16 %v353_v20, %v353_v20 }
  0xed   :  { %v144_v23 = vpop.f32.mrf.mxu0  ;;  %v176_v24 = vpop.f32.mrf.mxu1 }
  0xee   :  { %272 = vst.msk [vmem:[%s511_s2 + $0xc] sm:$0xf] %vm268_vm0, %v318_v21  ;;  %280 = vst.msk [vmem:[%s511_s2 + $0x2c] sm:$0xf] %vm268_vm0, %v326_v22  ;;  %v316_v25 = vpack.c.bf16 %v144_v23, %v144_v23  ;;  %v324_v26 = vpack.c.bf16 %v176_v24, %v176_v24 }
  0xef   :  { %v348_v27 = vpop.f32.mrf.mxu0  ;;  %v356_v28 = vpop.f32.mrf.mxu1 }
  0xf0   :  { %270 = vst.msk [vmem:[%s511_s2 + $0x4] sm:$0xf] %vm268_vm0, %v316_v25  ;;  %278 = vst.msk [vmem:[%s511_s2 + $0x24] sm:$0xf] %vm268_vm0, %v324_v26  ;;  %v321_v29 = vpack.c.bf16 %v348_v27, %v348_v27  ;;  %v329_v30 = vpack.c.bf16 %v356_v28, %v356_v28 }
  0xf1   :  { %v157_v31 = vpop.f32.mrf.mxu0  ;;  %v189_v32 = vpop.f32.mrf.mxu1 }
  0xf2   :  { %275 = vst.msk [vmem:[%s511_s2 + $0x18] sm:$0xf] %vm268_vm0, %v321_v29  ;;  %283 = vst.msk [vmem:[%s511_s2 + $0x38] sm:$0xf] %vm268_vm0, %v329_v30  ;;  %v319_v33 = vpack.c.bf16 %v157_v31, %v157_v31  ;;  %v327_v34 = vpack.c.bf16 %v189_v32, %v189_v32 }
  0xf3   :  { %v349_v35 = vpop.f32.mrf.mxu0  ;;  %v357_v36 = vpop.f32.mrf.mxu1 }
  0xf4   :  { %273 = vst.msk [vmem:[%s511_s2 + $0x10] sm:$0xf] %vm268_vm0, %v319_v33  ;;  %281 = vst.msk [vmem:[%s511_s2 + $0x30] sm:$0xf] %vm268_vm0, %v327_v34  ;;  %v322_v37 = vpack.c.bf16 %v349_v35, %v349_v35  ;;  %v330_v38 = vpack.c.bf16 %v357_v36, %v357_v36 }
  0xf5   :  { %v160_v39 = vpop.f32.mrf.mxu0  ;;  %v192_v40 = vpop.f32.mrf.mxu1 }
  0xf6   :  { %276 = vst.msk [vmem:[%s511_s2 + $0x1c] sm:$0xf] %vm268_vm0, %v322_v37  ;;  %284 = vst.msk [vmem:[%s511_s2 + $0x3c] sm:$0xf] %vm268_vm0, %v330_v38  ;;  %v320_v41 = vpack.c.bf16 %v160_v39, %v160_v39  ;;  %v328_v42 = vpack.c.bf16 %v192_v40, %v192_v40 }
  0xf8   :  { %274 = vst.msk [vmem:[%s511_s2 + $0x14] sm:$0xf] %vm268_vm0, %v320_v41  ;;  %282 = vst.msk [vmem:[%s511_s2 + $0x34] sm:$0xf] %vm268_vm0, %v328_v42 }
  0xf9   :  { %289 = vsyncpa [#allocation3], 1 }
  0xfa   :  { %290 = vsyncpa [#allocation5], 1 }

</bundles_post_ra>
